<compile_context>
chip_gen: v6e
topology: v6e:2x2x1
jax: 0.10.0
libtpu: 0.0.40
codegen_flags: <defaults>
</compile_context>

<pallas_src>
import jax
import jax.numpy as jnp
import numpy as np
from jax.experimental import pallas as pl
from jax.experimental.pallas import tpu as pltpu

BN_EPS = 1e-5
LANE = 128
SUBLANE = 8


def _round_up(x, m):
  return (x + m - 1) // m * m


def _aux_mlp_kernel(x_ref, w1_ref, fc1p_ref, w2_ref, b2_ref,
                    feat_ref, pred_ref):
  """Fused: Linear -> ReLU -> (Dropout=id) -> folded BatchNorm -> Linear."""
  x = x_ref[...]                                        # [TB, D]

  # fc: Linear(input_dim, hidden_dim) + bias (lanes padded to Hp).
  h = jnp.dot(x, w1_ref[...], preferred_element_type=jnp.float32)
  h = h + fc1p_ref[0:1, :]                              # b1 row

  # ReLU (Dropout p=0.2 is identity in eval mode).
  h = jnp.maximum(h, 0.0)

  # BatchNorm1d(eval), pre-folded: feat = h * scale + shift.
  feat = h * fc1p_ref[1:2, :] + fc1p_ref[2:3, :]
  feat_ref[...] = feat

  # pred: Linear(hidden_dim, num_labels) + bias (lanes padded to Cp).
  pred = jnp.dot(feat, w2_ref[...], preferred_element_type=jnp.float32)
  pred_ref[...] = pred + b2_ref[...]


def fold_and_pad_params(p):
  """Fold BN into scale/shift, zero-pad hidden/label lanes to 128-multiples."""
  D, H = p["w1"].shape
  C = p["w2"].shape[1]
  Hp = _round_up(H, LANE)
  Cp = _round_up(C, LANE)

  scale = p["gamma"] * jax.lax.rsqrt(p["running_var"] + BN_EPS)     # [1, H]
  shift = p["beta"] - p["running_mean"] * scale                     # [1, H]
  fc1p = jnp.concatenate([p["b1"], scale, shift], axis=0)           # [3, H]

  # Zero padding keeps padded lanes of feat/pred exactly 0.
  w1 = jnp.pad(p["w1"], ((0, 0), (0, Hp - H)))                      # [D, Hp]
  fc1p = jnp.pad(fc1p, ((0, 0), (0, Hp - H)))                       # [3, Hp]
  w2 = jnp.pad(p["w2"], ((0, Hp - H), (0, Cp - C)))                 # [Hp, Cp]
  b2 = jnp.pad(p["b2"], ((0, 0), (0, Cp - C)))                      # [1, Cp]

  return {"w1": w1, "fc1p": fc1p, "w2": w2, "b2": b2,
          "dims": (D, H, C, Hp, Cp)}


def auxiliary_model_forward(x, kp):
  """Returns (feature [B, H], pred_y [B, C]) like AuxiliaryModel.forward."""
  D, H, C, Hp, Cp = kp["dims"]
  B = x.shape[0]

  # Batch tile: sublane-aligned; 128-row tiles once the batch is big enough.
  Bp = _round_up(B, SUBLANE)
  if Bp >= 128:
    TB = 128
    Bp = _round_up(Bp, TB)
  else:
    TB = Bp
  if Bp != B:
    x = jnp.pad(x, ((0, Bp - B), (0, 0)))

  grid = (Bp // TB,)

  feat, pred = pl.pallas_call(
      _aux_mlp_kernel,
      out_shape=(
          jax.ShapeDtypeStruct((Bp, Hp), jnp.float32),   # feature (padded)
          jax.ShapeDtypeStruct((Bp, Cp), jnp.float32),   # pred_y  (padded)
      ),
      grid=grid,
      in_specs=[
          pl.BlockSpec((TB, D), lambda i: (i, 0)),       # x: batch tiled
          pl.BlockSpec((D, Hp), lambda i: (0, 0)),       # w1: resident
          pl.BlockSpec((3, Hp), lambda i: (0, 0)),       # b1 / bn scale / shift
          pl.BlockSpec((Hp, Cp), lambda i: (0, 0)),      # w2: resident
          pl.BlockSpec((1, Cp), lambda i: (0, 0)),       # b2
      ],
      out_specs=(
          pl.BlockSpec((TB, Hp), lambda i: (i, 0)),
          pl.BlockSpec((TB, Cp), lambda i: (i, 0)),
      ),
      compiler_params=pltpu.CompilerParams(
          dimension_semantics=("parallel",)),
  )(x, kp["w1"], kp["fc1p"], kp["w2"], kp["b2"])

  return feat[:B, :H], pred[:B, :C]


def init_params(key, input_dim, hidden_dim, num_labels):
  """Deterministic PyTorch-style Linear init (U(-1/sqrt(fan_in), +))."""
  k1, k2, k3, k4 = jax.random.split(key, 4)
  bound1 = 1.0 / np.sqrt(input_dim)
  bound2 = 1.0 / np.sqrt(hidden_dim)
  return {
      # stored transposed vs. torch nn.Linear.weight
      "w1": jax.random.uniform(k1, (input_dim, hidden_dim), jnp.float32,
                               -bound1, bound1),
      "b1": jax.random.uniform(k2, (1, hidden_dim), jnp.float32,
                               -bound1, bound1),
      "gamma": jnp.ones((1, hidden_dim), jnp.float32),
      "beta": jnp.zeros((1, hidden_dim), jnp.float32),
      "running_mean": jnp.zeros((1, hidden_dim), jnp.float32),
      "running_var": jnp.ones((1, hidden_dim), jnp.float32),
      "w2": jax.random.uniform(k3, (hidden_dim, num_labels), jnp.float32,
                               -bound2, bound2),
      "b2": jax.random.uniform(k4, (1, num_labels), jnp.float32,
                               -bound2, bound2),
  }


def reference_forward(x, p):
  """Pure-JAX reference of the same eval-mode forward pass."""
  h = x @ p["w1"] + p["b1"]
  h = jnp.maximum(h, 0.0)
  feat = (h - p["running_mean"]) / jnp.sqrt(p["running_var"] + BN_EPS)
  feat = feat * p["gamma"] + p["beta"]
  pred = feat @ p["w2"] + p["b2"]
  return feat, pred


if __name__ == "__main__":
  B, INPUT_DIM, HIDDEN_DIM, NUM_LABELS = 8, 32, 32, 10

  key = jax.random.PRNGKey(0)
  kx, kp = jax.random.split(key)
  x = jax.random.normal(kx, (B, INPUT_DIM), jnp.float32)
  params = init_params(kp, INPUT_DIM, HIDDEN_DIM, NUM_LABELS)

  kernel_params = fold_and_pad_params(params)
  feature, pred_y = auxiliary_model_forward(x, kernel_params)
  feature = jax.block_until_ready(feature)
  pred_y = jax.block_until_ready(pred_y)

  feat_ref, pred_ref = reference_forward(x, params)
  np.testing.assert_allclose(np.asarray(feature), np.asarray(feat_ref),
                             rtol=1e-5, atol=1e-5)
  np.testing.assert_allclose(np.asarray(pred_y), np.asarray(pred_ref),
                             rtol=1e-5, atol=1e-5)

  print("KERNEL_OK")
</pallas_src>

<mosaic_0001>
module attributes {stable_mosaic.version = 11 : i64} {
  func.func @_aux_mlp_kernel(%arg0: i32, %arg1: memref<8x32xf32, #tpu.memory_space<vmem>>, %arg2: memref<32x128xf32, #tpu.memory_space<vmem>>, %arg3: memref<3x128xf32, #tpu.memory_space<vmem>>, %arg4: memref<128x128xf32, #tpu.memory_space<vmem>>, %arg5: memref<1x128xf32, #tpu.memory_space<vmem>>, %arg6: memref<8x128xf32, #tpu.memory_space<vmem>>, %arg7: memref<8x128xf32, #tpu.memory_space<vmem>>) attributes {dimension_semantics = [#tpu.dimension_semantics<parallel>], iteration_bounds = array<i64: 1>, scalar_prefetch = 0 : i64, scratch_operands = 0 : i64, tpu.core_type = #tpu.core_type<tc>, window_params = [{transform_indices = @transform_0, window_bounds = array<i64: 8, 32>}, {pipeline_mode = #tpu.pipeline_mode<synchronous>, transform_indices = @transform_1, window_bounds = array<i64: 32, 128>}, {pipeline_mode = #tpu.pipeline_mode<synchronous>, transform_indices = @transform_2, window_bounds = array<i64: 3, 128>}, {pipeline_mode = #tpu.pipeline_mode<synchronous>, transform_indices = @transform_3, window_bounds = array<i64: 128, 128>}, {pipeline_mode = #tpu.pipeline_mode<synchronous>, transform_indices = @transform_4, window_bounds = array<i64: 1, 128>}, {transform_indices = @transform_5, window_bounds = array<i64: 8, 128>}, {transform_indices = @transform_6, window_bounds = array<i64: 8, 128>}]} {
    %c0 = arith.constant 0 : index
    %c0_0 = arith.constant 0 : index
    %0 = vector.load %arg1[%c0, %c0_0] : memref<8x32xf32, #tpu.memory_space<vmem>>, vector<8x32xf32>
    %c0_1 = arith.constant 0 : index
    %c0_2 = arith.constant 0 : index
    %1 = vector.load %arg2[%c0_1, %c0_2] : memref<32x128xf32, #tpu.memory_space<vmem>>, vector<32x128xf32>
    %cst = arith.constant dense<0.000000e+00> : vector<8x128xf32>
    %2 = tpu.matmul %0, %1, %cst {dimension_numbers = #tpu.dot_dimension_numbers<[1], [0], [0], [1], [0, 0, 1, 1], [], []>} : vector<8x32xf32>, vector<32x128xf32>, vector<8x128xf32> -> vector<8x128xf32>
    %c0_3 = arith.constant 0 : index
    %c0_4 = arith.constant 0 : index
    %3 = vector.load %arg3[%c0_3, %c0_4] : memref<3x128xf32, #tpu.memory_space<vmem>>, vector<1x128xf32>
    %4 = vector.broadcast %3 : vector<1x128xf32> to vector<8x128xf32>
    %5 = arith.addf %2, %4 : vector<8x128xf32>
    %cst_5 = arith.constant 0.000000e+00 : f32
    %6 = vector.broadcast %cst_5 : f32 to vector<8x128xf32>
    %7 = arith.maximumf %5, %6 : vector<8x128xf32>
    %c1 = arith.constant 1 : index
    %c0_6 = arith.constant 0 : index
    %8 = vector.load %arg3[%c1, %c0_6] : memref<3x128xf32, #tpu.memory_space<vmem>>, vector<1x128xf32>
    %9 = vector.broadcast %8 : vector<1x128xf32> to vector<8x128xf32>
    %10 = arith.mulf %7, %9 : vector<8x128xf32>
    %c2 = arith.constant 2 : index
    %c0_7 = arith.constant 0 : index
    %11 = vector.load %arg3[%c2, %c0_7] : memref<3x128xf32, #tpu.memory_space<vmem>>, vector<1x128xf32>
    %12 = vector.broadcast %11 : vector<1x128xf32> to vector<8x128xf32>
    %13 = arith.addf %10, %12 : vector<8x128xf32>
    %c0_8 = arith.constant 0 : index
    %c0_9 = arith.constant 0 : index
    %14 = vector.load %arg6[%c0_8, %c0_9] : memref<8x128xf32, #tpu.memory_space<vmem>>, vector<8x128xf32>
    tpu.vector_store %arg6[%c0_8, %c0_9], %13 {strides = array<i32>} : memref<8x128xf32, #tpu.memory_space<vmem>>, vector<8x128xf32>,
    %c0_10 = arith.constant 0 : index
    %c0_11 = arith.constant 0 : index
    %15 = vector.load %arg4[%c0_10, %c0_11] : memref<128x128xf32, #tpu.memory_space<vmem>>, vector<128x128xf32>
    %cst_12 = arith.constant dense<0.000000e+00> : vector<8x128xf32>
    %16 = tpu.matmul %13, %15, %cst_12 {dimension_numbers = #tpu.dot_dimension_numbers<[1], [0], [0], [1], [0, 0, 1, 1], [], []>} : vector<8x128xf32>, vector<128x128xf32>, vector<8x128xf32> -> vector<8x128xf32>
    %c0_13 = arith.constant 0 : index
    %c0_14 = arith.constant 0 : index
    %17 = vector.load %arg5[%c0_13, %c0_14] : memref<1x128xf32, #tpu.memory_space<vmem>>, vector<1x128xf32>
    %18 = vector.broadcast %17 : vector<1x128xf32> to vector<8x128xf32>
    %19 = arith.addf %16, %18 : vector<8x128xf32>
    %c0_15 = arith.constant 0 : index
    %c0_16 = arith.constant 0 : index
    %20 = vector.load %arg7[%c0_15, %c0_16] : memref<8x128xf32, #tpu.memory_space<vmem>>, vector<8x128xf32>
    tpu.vector_store %arg7[%c0_15, %c0_16], %19 {strides = array<i32>} : memref<8x128xf32, #tpu.memory_space<vmem>>, vector<8x128xf32>,
    return
  }
  func.func @transform_0(%arg0: i32) -> (i32, i32) {
    %c0_i32 = arith.constant 0 : i32
    %c0_i32_0 = arith.constant 0 : i32
    return %arg0, %c0_i32 : i32, i32
  }
  func.func @transform_1(%arg0: i32) -> (i32, i32) {
    %c0_i32 = arith.constant 0 : i32
    %c0_i32_0 = arith.constant 0 : i32
    %c0_i32_1 = arith.constant 0 : i32
    return %c0_i32, %c0_i32_0 : i32, i32
  }
  func.func @transform_2(%arg0: i32) -> (i32, i32) {
    %c0_i32 = arith.constant 0 : i32
    %c0_i32_0 = arith.constant 0 : i32
    %c0_i32_1 = arith.constant 0 : i32
    return %c0_i32, %c0_i32_0 : i32, i32
  }
  func.func @transform_3(%arg0: i32) -> (i32, i32) {
    %c0_i32 = arith.constant 0 : i32
    %c0_i32_0 = arith.constant 0 : i32
    %c0_i32_1 = arith.constant 0 : i32
    return %c0_i32, %c0_i32_0 : i32, i32
  }
  func.func @transform_4(%arg0: i32) -> (i32, i32) {
    %c0_i32 = arith.constant 0 : i32
    %c0_i32_0 = arith.constant 0 : i32
    %c0_i32_1 = arith.constant 0 : i32
    return %c0_i32, %c0_i32_0 : i32, i32
  }
  func.func @transform_5(%arg0: i32) -> (i32, i32) {
    %c0_i32 = arith.constant 0 : i32
    %c0_i32_0 = arith.constant 0 : i32
    return %arg0, %c0_i32 : i32, i32
  }
  func.func @transform_6(%arg0: i32) -> (i32, i32) {
    %c0_i32 = arith.constant 0 : i32
    %c0_i32_0 = arith.constant 0 : i32
    return %arg0, %c0_i32 : i32, i32
  }
}

</mosaic_0001>

<bundles_post_ra>
// kernel: tpu_custom_call.1
= control target key start
LH: loop header
LB: loop body
LE: loop exit
PB: predicated region body
PF: predicated region fallthrough
CT: control target
= control target key end

     0   :  { %12 = vsyncpa [#allocation3], 0  ;;  %s605_s0 = inlined_call_operand.hbm [shape: f32[8,32], index: 0, kind: input, shape index: {}]   ;;  %s606_s1 = inlined_call_operand.hbm [shape: f32[32,128], index: 1, kind: input, shape index: {}]   ;;  %s607_s2 = inlined_call_operand.hbm [shape: f32[3,128], index: 2, kind: input, shape index: {}]   ;;  %s608_s3 = inlined_call_operand.hbm [shape: f32[128,128], index: 3, kind: input, shape index: {}]   ;;  %s609_s4 = inlined_call_operand.vmem [shape: f32[1,128], index: 4, kind: input, shape index: {}]   ;;  %s610_s5 = inlined_call_operand.hbm [shape: f32[8,128], index: 5, kind: output, shape index: {0}]   ;;  %s611_s6 = inlined_call_operand.hbm [shape: f32[8,128], index: 6, kind: output, shape index: {1}]  }
   0x1   :  { %13 = vsyncpa [#allocation6], 0 }
   0x2   :  { %14 = vsyncpa [#allocation9], 0 }
   0x3   :  { %15 = vsyncpa [#allocation4], 0 }
   0x4   :  { %16 = vsyncpa [#allocation12], 0  ;;  %s511_s21 = smov [#allocation5]  }
   0x5   :  { %s32_s22 = sshll.u32 %s511_s21, 4  ;;  %s33_s22 = int_to_ptr.vmem [resolvable:$true] %s32_s22 }
   0x6   :  { %s389_s23 = scalar_lea.vmem %s33_s22, 512  ;;  %p394_p1 = scmp.lt.s32.totalorder %s33_s22, %s33_s22 }
   0x7   :  { %p390_p0 = scmp.ne.s32.totalorder %s33_s22, %s389_s23  ;;  %p395_p2 = scmp.lt.s32.totalorder %s389_s23, %s389_s23 }
   0x9   :  { %p396_p3 = por %p395_p2, %p394_p1 }
   0xb   :  { %p397_p4 = pnand %p396_p3, %p390_p0 }
   0xd   :  { %400 = shalt.err (!%p397_p4)
}
   0xe   :  { %s512_s24 = smov 128   ;;  %s513_s25 = smov 8  }
   0xf   :  { %38 = dma.hbm_to_vmem [thread:$0]  %s606_s1, 512, %s33_s22, [#allocation6], %s512_s24, %s512_s24, %s513_s25  }
  0x10   :  { %s514_s28 = smov [#allocation2]   ;;  %s515_s30 = smov [#allocation7]  }
  0x11   :  { %s23_s29 = sshll.u32 %s514_s28, 4  ;;  %s45_s7 = sshll.u32 %s515_s30, 4  ;;  %s24_s29 = int_to_ptr.vmem [resolvable:$true] %s23_s29  ;;  %s46_s7 = int_to_ptr.vmem [resolvable:$true] %s45_s7 }
  0x12   :  { %s409_s8 = scalar_lea.vmem %s24_s29, 128  ;;  %p414_p6 = scmp.lt.s32.totalorder %s24_s29, %s24_s29 }
  0x13   :  { %p410_p5 = scmp.ne.s32.totalorder %s24_s29, %s409_s8  ;;  %p415_p7 = scmp.lt.s32.totalorder %s409_s8, %s409_s8 }
  0x15   :  { %p416_p8 = por %p415_p7, %p414_p6 }
  0x17   :  { %p417_p9 = pnand %p416_p8, %p410_p5 }
  0x19   :  { %420 = shalt.err (!%p417_p9)
}
  0x1a   :  { %26 = dma.hbm_to_vmem [thread:$0]  %s605_s0, 128, %s24_s29, [#allocation3]  }
  0x1b   :  { %s429_s11 = scalar_lea.vmem %s46_s7, 64  ;;  %p434_p11 = scmp.lt.s32.totalorder %s46_s7, %s46_s7 }
  0x1c   :  { %p430_p10 = scmp.ne.s32.totalorder %s46_s7, %s429_s11  ;;  %p435_p12 = scmp.lt.s32.totalorder %s429_s11, %s429_s11 }
  0x1e   :  { %p436_p13 = por %p435_p12, %p434_p11 }
  0x20   :  { %p437_p0 = pnand %p436_p13, %p430_p10 }
  0x22   :  { %440 = shalt.err (!%p437_p0)
}
  0x23   :  { %48 = dma.hbm_to_vmem [thread:$0]  %s607_s2, 64, %s46_s7, [#allocation6]  }
  0x24   :  { %s516_s13 = smov [#allocation8]  }
  0x25   :  { %s54_s14 = sshll.u32 %s516_s13, 4  ;;  %s55_s14 = int_to_ptr.vmem [resolvable:$true] %s54_s14 }
  0x26   :  { %s449_s15 = scalar_lea.vmem %s55_s14, 2048  ;;  %p454_p2 = scmp.lt.s32.totalorder %s55_s14, %s55_s14 }
  0x27   :  { %p450_p1 = scmp.ne.s32.totalorder %s55_s14, %s449_s15  ;;  %p455_p3 = scmp.lt.s32.totalorder %s449_s15, %s449_s15 }
  0x29   :  { %p456_p4 = por %p455_p3, %p454_p2 }
  0x2b   :  { %p457_p5 = pnand %p456_p4, %p450_p1 }
  0x2d   :  { %460 = shalt.err (!%p457_p5)
}
  0x2e   :  { %60 = dma.hbm_to_vmem [thread:$0]  %s608_s3, 2048, %s55_s14, [#allocation9], %s512_s24, %s512_s24, %s513_s25  }
  0x2f   :  { %501 = dma.done.wait [#allocation3], 128  }
  0x30   :  { %502 = vsyncadd [#allocation3], 4294967168 }
  0x31   :  { %503 = dma.done.wait [#allocation6], 576  }
  0x32   :  { %504 = vsyncadd [#allocation6], 4294966720 }
  0x33   :  { %505 = dma.done.wait [#allocation9], 2048  }
  0x34   :  { %506 = vsyncadd [#allocation9], 4294965248  ;;  %v517_v0 = vmov 0.0   ;;  %vm518_vm0 = vmmov 0   ;;  %v79_v1 = vld [vmem:[#allocation5 + $0x18] sm:$0xff]  ;;  %v78_v2 = vld [vmem:[#allocation5 + $0x10] sm:$0xff] }
  0x35   :  { %325 = vmatprep.subr.mxu0 %v517_v0  ;;  %333 = vmatprep.mubr.msk.f32.mxu0 %vm518_vm0, %v517_v0  ;;  %v188_v3 = vld [vmem:[#allocation8 + $0x78] sm:$0xff]  ;;  %v77_v4 = vld [vmem:[#allocation5 + $0x8] sm:$0xff]  ;;  %v187_v5 = vld [vmem:[#allocation8 + $0x70] sm:$0xff]  ;;  %vm85_vm1 = vcmask 261120   ;;  %s519_s2 = smov [#allocation10]  }
  0x36   :  { %336 = vmatprep.subr.mxu1 %v517_v0  ;;  %368 = vmatprep.mubr.msk.f32.mxu1 %vm518_vm0, %v517_v0  ;;  %v186_v6 = vld [vmem:[#allocation8 + $0x68] sm:$0xff]  ;;  %v76_v7 = vld [vmem:[#allocation5] sm:$0xff]  ;;  %v75_v8 = vld [vmem:[#allocation2] sm:$0xff]  ;;  %s273_s3 = sshll.u32 %s519_s2, 4  ;;  %s274_s3 = int_to_ptr.vmem [resolvable:$true] %s273_s3 }
  0x37   :  { %326 = vmatpush3.msra.mxu0 %v79_v1  ;;  %337 = vmatpush3.msra.mxu1 %v188_v3  ;;  %v185_v9 = vld [vmem:[#allocation8 + $0x60] sm:$0xff]  ;;  %v184_v10 = vld [vmem:[#allocation8 + $0x58] sm:$0xff]  ;;  %v183_v11 = vld [vmem:[#allocation8 + $0x50] sm:$0xff]  ;;  %s461_s17 = scalar_lea.vmem %s274_s3, 128  ;;  %p466_p7 = scmp.lt.s32.totalorder %s274_s3, %s274_s3 }
  0x38   :  { %327 = vmatprep.subr.mxu0 %v517_v0  ;;  %338 = vmatprep.subr.mxu1 %v517_v0  ;;  %v182_v12 = vld [vmem:[#allocation8 + $0x48] sm:$0xff]  ;;  %v181_v13 = vld [vmem:[#allocation8 + $0x40] sm:$0xff]  ;;  %v180_v14 = vld [vmem:[#allocation8 + $0x38] sm:$0xff]  ;;  %p462_p6 = scmp.ne.s32.totalorder %s274_s3, %s461_s17  ;;  %p467_p8 = scmp.lt.s32.totalorder %s461_s17, %s461_s17 }
  0x39   :  { %328 = vmatpush3.msra.mxu0 %v78_v2  ;;  %339 = vmatpush3.msra.mxu1 %v187_v5  ;;  %v179_v15 = vld [vmem:[#allocation8 + $0x30] sm:$0xff]  ;;  %v178_v16 = vld [vmem:[#allocation8 + $0x28] sm:$0xff]  ;;  %v177_v17 = vld [vmem:[#allocation8 + $0x20] sm:$0xff] }
  0x3a   :  { %329 = vmatprep.subr.mxu0 %v517_v0  ;;  %340 = vmatprep.subr.mxu1 %v517_v0  ;;  %v176_v18 = vld [vmem:[#allocation8 + $0x18] sm:$0xff]  ;;  %v175_v19 = vld [vmem:[#allocation8 + $0x10] sm:$0xff]  ;;  %v174_v20 = vld [vmem:[#allocation8 + $0x8] sm:$0xff]  ;;  %p468_p9 = por %p467_p8, %p466_p7 }
  0x3b   :  { %330 = vmatpush3.msra.mxu0 %v77_v4  ;;  %341 = vmatpush3.msra.mxu1 %v186_v6  ;;  %v173_v21 = vld [vmem:[#allocation8] sm:$0xff]  ;;  %v298_v22 = vld [vmem:[#allocation7] ss:$0 sm:$0xff]  ;;  %v300_v25 = vld [vmem:[#allocation7 + $0x1] ss:$0 sm:$0xff] }
  0x3c   :  { %331 = vmatprep.subr.mxu0 %v517_v0  ;;  %342 = vmatprep.subr.mxu1 %v517_v0  ;;  %v301_v28 = vld [vmem:[#allocation7 + $0x2] ss:$0 sm:$0xff]  ;;  %p469_p10 = pnand %p468_p9, %p462_p6 }
  0x3d   :  { %332 = vmatpush3.msra.mxu0 %v76_v7  ;;  %343 = vmatpush3.msra.mxu1 %v185_v9 }
  0x3e   :  { %334 = vmatmul.mubr.msk.f32.vlgmr.msra.gmra.mxu0 %vm85_vm1, %v75_v8  ;;  %344 = vmatprep.subr.mxu1 %v517_v0 }
  0x3f   :  { %345 = vmatpush3.msra.mxu1 %v184_v10 }
  0x40   :  { %346 = vmatprep.subr.mxu1 %v517_v0 }
  0x41   :  { %347 = vmatpush3.msra.mxu1 %v183_v11 }
  0x42   :  { %348 = vmatprep.subr.mxu1 %v517_v0 }
  0x43   :  { %349 = vmatpush3.msra.mxu1 %v182_v12 }
  0x44   :  { %350 = vmatprep.subr.mxu1 %v517_v0 }
  0x45   :  { %351 = vmatpush3.msra.mxu1 %v181_v13 }
  0x46   :  { %352 = vmatprep.subr.mxu1 %v517_v0 }
  0x47   :  { %353 = vmatpush3.msra.mxu1 %v180_v14 }
  0x48   :  { %354 = vmatprep.subr.mxu1 %v517_v0 }
  0x49   :  { %355 = vmatpush3.msra.mxu1 %v179_v15 }
  0x4a   :  { %356 = vmatprep.subr.mxu1 %v517_v0 }
  0x4b   :  { %357 = vmatpush3.msra.mxu1 %v178_v16 }
  0x4c   :  { %358 = vmatprep.subr.mxu1 %v517_v0 }
  0x4d   :  { %359 = vmatpush3.msra.mxu1 %v177_v17 }
  0x4e   :  { %360 = vmatprep.subr.mxu1 %v517_v0 }
  0x4f   :  { %361 = vmatpush3.msra.mxu1 %v176_v18 }
  0x50   :  { %362 = vmatprep.subr.mxu1 %v517_v0 }
  0x51   :  { %363 = vmatpush3.msra.mxu1 %v175_v19 }
  0x52   :  { %364 = vmatprep.subr.mxu1 %v517_v0 }
  0x53   :  { %365 = vmatpush3.msra.mxu1 %v174_v20 }
  0x54   :  { %366 = vmatprep.subr.mxu1 %v517_v0 }
  0x55   :  { %367 = vmatpush3.msra.mxu1 %v173_v21 }
  0xfe   :  { %v155_v23 = vpop.f32.mrf.mxu0 }
  0xff   :  { %v156_v24 = vadd.f32 %v298_v22, %v155_v23 }
 0x100   :  { %v335_v26 = vpop.f32.mrf.mxu0 }
 0x101   :  { %v159_v27 = vmax.f32 %v156_v24, 0.0 }
 0x103   :  { %v165_v29 = vmul.f32 %v300_v25, %v159_v27 }
 0x105   :  { %v171_v30 = vadd.f32 %v301_v28, %v165_v29 }
 0x107   :  { %369 = vmatmul.mubr.f32.vlgmr.msra.gmra.mxu1 %v171_v30  ;;  %172 = vst [vmem:[#allocation10] sm:$0xff] %v171_v30 }
 0x108   :  { %472 = shalt.err (!%p469_p10)
}
 0x109   :  { %276 = dma.vmem_to_hbm [thread:$0]  %s274_s3, 128, %s610_s5, [#allocation4]   ;;  %v302_v31 = vld [vmem:[%s609_s4] ss:$0 sm:$0xff] }
 0x10a   :  { %s520_s22 = smov [#allocation11]  }
 0x10b   :  { %s283_s23 = sshll.u32 %s520_s22, 4  ;;  %s284_s23 = int_to_ptr.vmem [resolvable:$true] %s283_s23 }
 0x10c   :  { %s481_s24 = scalar_lea.vmem %s284_s23, 128  ;;  %p486_p12 = scmp.lt.s32.totalorder %s284_s23, %s284_s23 }
 0x10d   :  { %p482_p11 = scmp.ne.s32.totalorder %s284_s23, %s481_s24  ;;  %p487_p13 = scmp.lt.s32.totalorder %s481_s24, %s481_s24 }
 0x10f   :  { %p488_p0 = por %p487_p13, %p486_p12 }
 0x111   :  { %p489_p1 = pnand %p488_p0, %p482_p11 }
 0x1c7   :  { %v262_v32 = vpop.f32.mrf.mxu1 }
 0x1c8   :  { %v263_v33 = vadd.f32 %v302_v31, %v262_v32 }
 0x1c9   :  { %v370_v34 = vpop.f32.mrf.mxu1 }
 0x1ca   :  { %266 = vst [vmem:[#allocation11] sm:$0xff] %v263_v33 }
 0x1cb   :  { %492 = shalt.err (!%p489_p1)
}
 0x1cc   :  { %286 = dma.vmem_to_hbm [thread:$0]  %s284_s23, 128, %s611_s6, [#allocation12]  }
 0x1cd   :  { %507 = dma.done.wait [#allocation4], 128  }
 0x1ce   :  { %508 = vsyncadd [#allocation4], 4294967168 }
 0x1cf   :  { %509 = dma.done.wait [#allocation12], 128  }
 0x1d0   :  { %510 = vsyncadd [#allocation12], 4294967168 }
 0x1d1   :  { %293 = vsyncpa [#allocation3], 1 }
 0x1d2   :  { %294 = vsyncpa [#allocation6], 1 }
 0x1d3   :  { %295 = vsyncpa [#allocation9], 1 }
 0x1d4   :  { %296 = vsyncpa [#allocation4], 1 }
 0x1d5   :  { %297 = vsyncpa [#allocation12], 1 }

</bundles_post_ra>
